<compile_context>
chip_gen: v6e
topology: v6e:2x2x1
jax: 0.10.0
libtpu: 0.0.40
codegen_flags: <defaults>
</compile_context>

<pallas_src>
import functools

import jax
import jax.numpy as jnp
import numpy as np
from jax.experimental import pallas as pl
from jax.experimental.pallas import tpu as pltpu

EPS = 1e-5  # torch.nn.LayerNorm default eps
LANE = 128
SUBLANE = 8


def _round_up(v, m):
    return (v + m - 1) // m * m


def bytenet_block_kernel(x_ref,
                         g1_ref, b1_ref, w1_ref, wb1_ref,
                         g2_ref, b2_ref,
                         wc_ref, bc_ref,
                         g3_ref, b3_ref, w2_ref, wb2_ref,
                         o_ref,
                         h_pad_ref,
                         *, kernel_size, dilation, d_in, d_h):
    x = x_ref[0].astype(jnp.float32)                   # (L, d_in_pad)
    L = x.shape[0]
    pad = dilation * (kernel_size - 1) // 2
    front = _round_up(pad, SUBLANE)                    # sublane-aligned front halo

    d_in_pad = x.shape[-1]
    d_h_pad = wc_ref.shape[-1]

    # Lane masks marking the real (non-padding) channels.
    in_mask = jax.lax.broadcasted_iota(jnp.int32, (1, d_in_pad), 1) < d_in
    h_mask = jax.lax.broadcasted_iota(jnp.int32, (1, d_h_pad), 1) < d_h

    def layer_norm(h, gamma, beta, mask, d_real):
        # Padding lanes of `h` are exactly 0, so summing all lanes and
        # dividing by the true channel count reproduces torch.nn.LayerNorm.
        mu = jnp.sum(h, axis=-1, keepdims=True) * (1.0 / d_real)
        diff = jnp.where(mask, h - mu, 0.0)
        var = jnp.sum(diff * diff, axis=-1, keepdims=True) * (1.0 / d_real)
        return diff * jax.lax.rsqrt(var + EPS) * gamma + beta

    # --- sequence1: LN(d_in) -> ReLU -> PFF(d_in->d_h) -> LN(d_h) -> ReLU ---
    h = layer_norm(x, g1_ref[...], b1_ref[...], in_mask, d_in)
    h = jnp.maximum(h, 0.0)
    h = jnp.dot(h.astype(jnp.bfloat16), w1_ref[...],
                preferred_element_type=jnp.float32) + wb1_ref[...]
    h = layer_norm(h, g2_ref[...], b2_ref[...], h_mask, d_h)
    h = jnp.maximum(h, 0.0)                             # (L, d_h_pad), f32

    # --- MaskedConv1d(d_h, d_h, kernel_size, dilation), 'same' zero padding.
    # Persistent VMEM scratch holds [zero halo | h | zero halo]; each tap is a
    # static-offset load feeding one bf16 MXU matmul with f32 accumulation.
    h_bf = h.astype(jnp.bfloat16)
    if pad > 0:
        # Halo re-zeroed every grid step (scratch is per-core; cheap anyway).
        h_pad_ref[:front, :] = jnp.zeros((front, d_h_pad), jnp.bfloat16)
        h_pad_ref[front + L:, :] = jnp.zeros((pad, d_h_pad), jnp.bfloat16)
    h_pad_ref[front:front + L, :] = h_bf                # sublane-aligned store

    acc = None
    for t in range(kernel_size):                        # static, small trip count
        off = front - pad + t * dilation
        window = h_pad_ref[off:off + L, :]              # (L, d_h_pad) bf16
        contrib = jnp.dot(window, wc_ref[t], preferred_element_type=jnp.float32)
        acc = contrib if acc is None else acc + contrib
    acc = acc + bc_ref[...]                             # conv bias, added once

    # --- sequence2: LN(d_h) -> ReLU -> PFF(d_h->d_out) ---
    h = layer_norm(acc, g3_ref[...], b3_ref[...], h_mask, d_h)
    h = jnp.maximum(h, 0.0)
    h = jnp.dot(h.astype(jnp.bfloat16), w2_ref[...],
                preferred_element_type=jnp.float32) + wb2_ref[...]

    # --- residual ---
    o_ref[0] = (x + h).astype(o_ref.dtype)


def bytenet_block(x, params, *, kernel_size, dilation):
    """x: (N, L, d_in) channels-last. Returns (N, L, d_out) with d_out == d_in."""
    N, L, d_in = x.shape
    d_h = params["w1"].shape[1]
    d_out = params["w2"].shape[1]

    assert d_in == d_out, "residual requires d_in == d_out"
    assert kernel_size % 2 == 1, (
        "even kernel_size needs asymmetric 'same' padding; not supported")

    pad = dilation * (kernel_size - 1) // 2
    front = _round_up(pad, SUBLANE)

    # Pad channels to lane-dense multiples of 128; padding lanes are zero.
    d_in_p = _round_up(d_in, LANE)
    d_h_p = _round_up(d_h, LANE)
    d_out_p = _round_up(d_out, LANE)

    def pad2(a, rows, cols):
        return jnp.pad(a, ((0, rows - a.shape[0]), (0, cols - a.shape[1])))

    xp = jnp.pad(x, ((0, 0), (0, 0), (0, d_in_p - d_in)))

    g1 = pad2(params["g1"], 1, d_in_p)
    b1 = pad2(params["b1"], 1, d_in_p)
    w1 = pad2(params["w1"], d_in_p, d_h_p).astype(jnp.bfloat16)
    wb1 = pad2(params["wb1"], 1, d_h_p)
    g2 = pad2(params["g2"], 1, d_h_p)
    b2 = pad2(params["b2"], 1, d_h_p)
    wc = jnp.pad(params["wc"],
                 ((0, 0), (0, d_h_p - d_h), (0, d_h_p - d_h))).astype(jnp.bfloat16)
    bc = pad2(params["bc"], 1, d_h_p)
    g3 = pad2(params["g3"], 1, d_h_p)
    b3 = pad2(params["b3"], 1, d_h_p)
    w2 = pad2(params["w2"], d_h_p, d_out_p).astype(jnp.bfloat16)
    wb2 = pad2(params["wb2"], 1, d_out_p)

    # Explicit VMEM budget (weights double-buffered, I/O blocks double-buffered,
    # scratch, plus headroom for live f32 intermediates).
    itemsize = jnp.dtype(x.dtype).itemsize
    weight_bytes = ((w1.size + wc.size + w2.size) * 2 +
                    (g1.size + b1.size + wb1.size + g2.size + b2.size + bc.size +
                     g3.size + b3.size + wb2.size) * 4)
    io_bytes = 2 * (L * d_in_p + L * d_out_p) * itemsize
    scratch_bytes = (front + L + pad) * d_h_p * 2
    act_bytes = 8 * L * max(d_in_p, d_h_p) * 4
    needed = 2 * weight_bytes + io_bytes + scratch_bytes + act_bytes
    vmem_limit = int(min(max(needed + (8 << 20), 32 << 20), 64 << 20))

    def full(shape):
        nd = len(shape)
        return pl.BlockSpec(shape, lambda n, _nd=nd: (0,) * _nd)

    kernel = functools.partial(bytenet_block_kernel,
                               kernel_size=kernel_size, dilation=dilation,
                               d_in=d_in, d_h=d_h)

    out_p = pl.pallas_call(
        kernel,
        out_shape=jax.ShapeDtypeStruct((N, L, d_out_p), x.dtype),
        grid_spec=pltpu.PrefetchScalarGridSpec(
            num_scalar_prefetch=0,
            grid=(N,),
            in_specs=[
                pl.BlockSpec((1, L, d_in_p), lambda n: (n, 0, 0)),      # x
                full((1, d_in_p)), full((1, d_in_p)),                   # LN1 gamma/beta
                full((d_in_p, d_h_p)), full((1, d_h_p)),                # PFF1 W^T (bf16), bias
                full((1, d_h_p)), full((1, d_h_p)),                     # LN2 gamma/beta
                full((kernel_size, d_h_p, d_h_p)), full((1, d_h_p)),    # conv taps (bf16), bias
                full((1, d_h_p)), full((1, d_h_p)),                     # LN3 gamma/beta
                full((d_h_p, d_out_p)), full((1, d_out_p)),             # PFF2 W^T (bf16), bias
            ],
            out_specs=pl.BlockSpec((1, L, d_out_p), lambda n: (n, 0, 0)),
            scratch_shapes=[pltpu.VMEM((front + L + pad, d_h_p), jnp.bfloat16)],
        ),
        compiler_params=pltpu.CompilerParams(
            dimension_semantics=("parallel",),
            vmem_limit_bytes=vmem_limit,
        ),
    )(xp,
      g1, b1, w1, wb1,
      g2, b2,
      wc, bc,
      g3, b3, w2, wb2)

    return out_p[:, :, :d_out]


def reference(x, p, *, kernel_size, dilation):
    """Pure-JAX f32 reference matching the PyTorch forward semantics."""
    def ln(h, g, b):
        mu = h.mean(-1, keepdims=True)
        var = ((h - mu) ** 2).mean(-1, keepdims=True)
        return (h - mu) / jnp.sqrt(var + EPS) * g + b

    h = jax.nn.relu(ln(x, p["g1"], p["b1"]))
    h = h @ p["w1"] + p["wb1"]
    h = jax.nn.relu(ln(h, p["g2"], p["b2"]))
    pad = dilation * (kernel_size - 1) // 2
    h = jax.lax.conv_general_dilated(
        h, p["wc_oiw"], window_strides=(1,), padding=[(pad, pad)],
        rhs_dilation=(dilation,),
        dimension_numbers=("NWC", "OIW", "NWC")) + p["bc"]
    h = jax.nn.relu(ln(h, p["g3"], p["b3"]))
    h = h @ p["w2"] + p["wb2"]
    return x + h


if __name__ == "__main__":
    # Small shapes consistent with the module (residual requires d_in == d_out).
    N, L = 2, 16
    d_in = d_out = 16
    d_h = 32
    kernel_size = 5
    dilation = 2

    key = jax.random.PRNGKey(0)
    ks = jax.random.split(key, 16)

    x = jax.random.normal(ks[0], (N, L, d_in), jnp.float32)

    def u(k, shape, scale=0.1):
        return scale * jax.random.normal(k, shape, jnp.float32)

    wc_oiw = u(ks[1], (d_h, d_h, kernel_size))          # torch Conv1d weight (out, in, k)
    params = {
        "g1": 1.0 + u(ks[2], (1, d_in)), "b1": u(ks[3], (1, d_in)),
        "w1": u(ks[4], (d_in, d_h)),     "wb1": u(ks[5], (1, d_h)),     # PFF1 (W^T, b)
        # per-tap (d_h_in, d_h_out) matrices: wc[t] = W_torch[:, :, t].T
        "g2": 1.0 + u(ks[6], (1, d_h)),  "b2": u(ks[7], (1, d_h)),
        "wc": jnp.transpose(wc_oiw, (2, 1, 0)),
        "wc_oiw": wc_oiw,
        "bc": u(ks[8], (1, d_h)),
        "g3": 1.0 + u(ks[9], (1, d_h)),  "b3": u(ks[10], (1, d_h)),
        "w2": u(ks[11], (d_h, d_out)),   "wb2": u(ks[12], (1, d_out)),  # PFF2 (W^T, b)
    }

    out = bytenet_block(x, params, kernel_size=kernel_size, dilation=dilation)
    out = jax.block_until_ready(out)

    ref = reference(x, params, kernel_size=kernel_size, dilation=dilation)
    # bf16 MXU operands (f32 accumulation) vs. the f32 reference -> loose tol.
    np.testing.assert_allclose(np.asarray(out), np.asarray(ref), rtol=2e-2, atol=2e-2)

    print("KERNEL_OK")
</pallas_src>

<mosaic_0001>
module attributes {stable_mosaic.version = 11 : i64} {
  func.func @bytenet_block_kernel(%arg0: i32, %arg1: memref<1x16x128xf32, #tpu.memory_space<vmem>>, %arg2: memref<1x128xf32, #tpu.memory_space<vmem>>, %arg3: memref<1x128xf32, #tpu.memory_space<vmem>>, %arg4: memref<128x128xbf16, #tpu.memory_space<vmem>>, %arg5: memref<1x128xf32, #tpu.memory_space<vmem>>, %arg6: memref<1x128xf32, #tpu.memory_space<vmem>>, %arg7: memref<1x128xf32, #tpu.memory_space<vmem>>, %arg8: memref<5x128x128xbf16, #tpu.memory_space<vmem>>, %arg9: memref<1x128xf32, #tpu.memory_space<vmem>>, %arg10: memref<1x128xf32, #tpu.memory_space<vmem>>, %arg11: memref<1x128xf32, #tpu.memory_space<vmem>>, %arg12: memref<128x128xbf16, #tpu.memory_space<vmem>>, %arg13: memref<1x128xf32, #tpu.memory_space<vmem>>, %arg14: memref<1x16x128xf32, #tpu.memory_space<vmem>>, %arg15: memref<28x128xbf16, #tpu.memory_space<vmem>>) attributes {dimension_semantics = [#tpu.dimension_semantics<parallel>], iteration_bounds = array<i64: 2>, scalar_prefetch = 0 : i64, scratch_operands = 1 : i64, tpu.core_type = #tpu.core_type<tc>, window_params = [{transform_indices = @transform_0, window_bounds = array<i64: 1, 16, 128>}, {pipeline_mode = #tpu.pipeline_mode<synchronous>, transform_indices = @transform_1, window_bounds = array<i64: 1, 128>}, {pipeline_mode = #tpu.pipeline_mode<synchronous>, transform_indices = @transform_2, window_bounds = array<i64: 1, 128>}, {pipeline_mode = #tpu.pipeline_mode<synchronous>, transform_indices = @transform_3, window_bounds = array<i64: 128, 128>}, {pipeline_mode = #tpu.pipeline_mode<synchronous>, transform_indices = @transform_4, window_bounds = array<i64: 1, 128>}, {pipeline_mode = #tpu.pipeline_mode<synchronous>, transform_indices = @transform_5, window_bounds = array<i64: 1, 128>}, {pipeline_mode = #tpu.pipeline_mode<synchronous>, transform_indices = @transform_6, window_bounds = array<i64: 1, 128>}, {pipeline_mode = #tpu.pipeline_mode<synchronous>, transform_indices = @transform_7, window_bounds = array<i64: 5, 128, 128>}, {pipeline_mode = #tpu.pipeline_mode<synchronous>, transform_indices = @transform_8, window_bounds = array<i64: 1, 128>}, {pipeline_mode = #tpu.pipeline_mode<synchronous>, transform_indices = @transform_9, window_bounds = array<i64: 1, 128>}, {pipeline_mode = #tpu.pipeline_mode<synchronous>, transform_indices = @transform_10, window_bounds = array<i64: 1, 128>}, {pipeline_mode = #tpu.pipeline_mode<synchronous>, transform_indices = @transform_11, window_bounds = array<i64: 128, 128>}, {pipeline_mode = #tpu.pipeline_mode<synchronous>, transform_indices = @transform_12, window_bounds = array<i64: 1, 128>}, {transform_indices = @transform_13, window_bounds = array<i64: 1, 16, 128>}]} {
    %c0 = arith.constant 0 : index
    %c0_0 = arith.constant 0 : index
    %c0_1 = arith.constant 0 : index
    %0 = vector.load %arg1[%c0, %c0_0, %c0_1] : memref<1x16x128xf32, #tpu.memory_space<vmem>>, vector<1x16x128xf32>
    %1 = vector.shape_cast %0 : vector<1x16x128xf32> to vector<16x128xf32>
    %2 = tpu.iota {dimensions = array<i32: 1>} : vector<1x128xi32>
    %c16_i32 = arith.constant 16 : i32
    %3 = vector.broadcast %c16_i32 : i32 to vector<1x128xi32>
    %4 = arith.cmpi slt, %2, %3 : vector<1x128xi32>
    %5 = tpu.iota {dimensions = array<i32: 1>} : vector<1x128xi32>
    %c32_i32 = arith.constant 32 : i32
    %6 = vector.broadcast %c32_i32 : i32 to vector<1x128xi32>
    %7 = arith.cmpi slt, %5, %6 : vector<1x128xi32>
    %c0_2 = arith.constant 0 : index
    %c0_3 = arith.constant 0 : index
    %8 = vector.load %arg2[%c0_2, %c0_3] : memref<1x128xf32, #tpu.memory_space<vmem>>, vector<1x128xf32>
    %c0_4 = arith.constant 0 : index
    %c0_5 = arith.constant 0 : index
    %9 = vector.load %arg3[%c0_4, %c0_5] : memref<1x128xf32, #tpu.memory_space<vmem>>, vector<1x128xf32>
    %cst = arith.constant dense<0.000000e+00> : vector<16xf32>
    %10 = vector.multi_reduction <add>, %1, %cst [1] : vector<16x128xf32> to vector<16xf32>
    %11 = vector.shape_cast %10 : vector<16xf32> to vector<16x1xf32>
    %cst_6 = arith.constant 6.250000e-02 : f32
    %12 = vector.broadcast %cst_6 : f32 to vector<16x1xf32>
    %13 = arith.mulf %11, %12 : vector<16x1xf32>
    %14 = vector.broadcast %13 : vector<16x1xf32> to vector<16x128xf32>
    %15 = arith.subf %1, %14 : vector<16x128xf32>
    %cst_7 = arith.constant 0.000000e+00 : f32
    %16 = vector.shape_cast %4 : vector<1x128xi1> to vector<1x128xi1>
    %17 = vector.broadcast %16 : vector<1x128xi1> to vector<16x128xi1>
    %18 = vector.broadcast %cst_7 : f32 to vector<16x128xf32>
    %19 = arith.select %17, %15, %18 : vector<16x128xi1>, vector<16x128xf32>
    %20 = arith.mulf %19, %19 : vector<16x128xf32>
    %cst_8 = arith.constant dense<0.000000e+00> : vector<16xf32>
    %21 = vector.multi_reduction <add>, %20, %cst_8 [1] : vector<16x128xf32> to vector<16xf32>
    %22 = vector.shape_cast %21 : vector<16xf32> to vector<16x1xf32>
    %cst_9 = arith.constant 6.250000e-02 : f32
    %23 = vector.broadcast %cst_9 : f32 to vector<16x1xf32>
    %24 = arith.mulf %22, %23 : vector<16x1xf32>
    %cst_10 = arith.constant 9.99999974E-6 : f32
    %25 = vector.broadcast %cst_10 : f32 to vector<16x1xf32>
    %26 = arith.addf %24, %25 : vector<16x1xf32>
    %27 = math.rsqrt %26 : vector<16x1xf32>
    %28 = vector.broadcast %27 : vector<16x1xf32> to vector<16x128xf32>
    %29 = arith.mulf %19, %28 : vector<16x128xf32>
    %30 = vector.broadcast %8 : vector<1x128xf32> to vector<16x128xf32>
    %31 = arith.mulf %29, %30 : vector<16x128xf32>
    %32 = vector.broadcast %9 : vector<1x128xf32> to vector<16x128xf32>
    %33 = arith.addf %31, %32 : vector<16x128xf32>
    %cst_11 = arith.constant 0.000000e+00 : f32
    %34 = vector.broadcast %cst_11 : f32 to vector<16x128xf32>
    %35 = arith.maximumf %33, %34 : vector<16x128xf32>
    %36 = arith.truncf %35 : vector<16x128xf32> to vector<16x128xbf16>
    %c0_12 = arith.constant 0 : index
    %c0_13 = arith.constant 0 : index
    %37 = vector.load %arg4[%c0_12, %c0_13] : memref<128x128xbf16, #tpu.memory_space<vmem>>, vector<128x128xbf16>
    %cst_14 = arith.constant dense<0.000000e+00> : vector<16x128xf32>
    %38 = tpu.matmul %36, %37, %cst_14 {dimension_numbers = #tpu.dot_dimension_numbers<[1], [0], [0], [1], [0, 0, 1, 1], [], []>} : vector<16x128xbf16>, vector<128x128xbf16>, vector<16x128xf32> -> vector<16x128xf32>
    %c0_15 = arith.constant 0 : index
    %c0_16 = arith.constant 0 : index
    %39 = vector.load %arg5[%c0_15, %c0_16] : memref<1x128xf32, #tpu.memory_space<vmem>>, vector<1x128xf32>
    %40 = vector.broadcast %39 : vector<1x128xf32> to vector<16x128xf32>
    %41 = arith.addf %38, %40 : vector<16x128xf32>
    %c0_17 = arith.constant 0 : index
    %c0_18 = arith.constant 0 : index
    %42 = vector.load %arg6[%c0_17, %c0_18] : memref<1x128xf32, #tpu.memory_space<vmem>>, vector<1x128xf32>
    %c0_19 = arith.constant 0 : index
    %c0_20 = arith.constant 0 : index
    %43 = vector.load %arg7[%c0_19, %c0_20] : memref<1x128xf32, #tpu.memory_space<vmem>>, vector<1x128xf32>
    %cst_21 = arith.constant dense<0.000000e+00> : vector<16xf32>
    %44 = vector.multi_reduction <add>, %41, %cst_21 [1] : vector<16x128xf32> to vector<16xf32>
    %45 = vector.shape_cast %44 : vector<16xf32> to vector<16x1xf32>
    %cst_22 = arith.constant 3.125000e-02 : f32
    %46 = vector.broadcast %cst_22 : f32 to vector<16x1xf32>
    %47 = arith.mulf %45, %46 : vector<16x1xf32>
    %48 = vector.broadcast %47 : vector<16x1xf32> to vector<16x128xf32>
    %49 = arith.subf %41, %48 : vector<16x128xf32>
    %cst_23 = arith.constant 0.000000e+00 : f32
    %50 = vector.shape_cast %7 : vector<1x128xi1> to vector<1x128xi1>
    %51 = vector.broadcast %50 : vector<1x128xi1> to vector<16x128xi1>
    %52 = vector.broadcast %cst_23 : f32 to vector<16x128xf32>
    %53 = arith.select %51, %49, %52 : vector<16x128xi1>, vector<16x128xf32>
    %54 = arith.mulf %53, %53 : vector<16x128xf32>
    %cst_24 = arith.constant dense<0.000000e+00> : vector<16xf32>
    %55 = vector.multi_reduction <add>, %54, %cst_24 [1] : vector<16x128xf32> to vector<16xf32>
    %56 = vector.shape_cast %55 : vector<16xf32> to vector<16x1xf32>
    %cst_25 = arith.constant 3.125000e-02 : f32
    %57 = vector.broadcast %cst_25 : f32 to vector<16x1xf32>
    %58 = arith.mulf %56, %57 : vector<16x1xf32>
    %cst_26 = arith.constant 9.99999974E-6 : f32
    %59 = vector.broadcast %cst_26 : f32 to vector<16x1xf32>
    %60 = arith.addf %58, %59 : vector<16x1xf32>
    %61 = math.rsqrt %60 : vector<16x1xf32>
    %62 = vector.broadcast %61 : vector<16x1xf32> to vector<16x128xf32>
    %63 = arith.mulf %53, %62 : vector<16x128xf32>
    %64 = vector.broadcast %42 : vector<1x128xf32> to vector<16x128xf32>
    %65 = arith.mulf %63, %64 : vector<16x128xf32>
    %66 = vector.broadcast %43 : vector<1x128xf32> to vector<16x128xf32>
    %67 = arith.addf %65, %66 : vector<16x128xf32>
    %cst_27 = arith.constant 0.000000e+00 : f32
    %68 = vector.broadcast %cst_27 : f32 to vector<16x128xf32>
    %69 = arith.maximumf %67, %68 : vector<16x128xf32>
    %70 = arith.truncf %69 : vector<16x128xf32> to vector<16x128xbf16>
    %cst_28 = arith.constant 0.000000e+00 : bf16
    %71 = vector.broadcast %cst_28 : bf16 to vector<8x128xbf16>
    %c0_29 = arith.constant 0 : index
    %c0_30 = arith.constant 0 : index
    %72 = vector.load %arg15[%c0_29, %c0_30] : memref<28x128xbf16, #tpu.memory_space<vmem>>, vector<8x128xbf16>
    tpu.vector_store %arg15[%c0_29, %c0_30], %71 {strides = array<i32>} : memref<28x128xbf16, #tpu.memory_space<vmem>>, vector<8x128xbf16>,
    %cst_31 = arith.constant 0.000000e+00 : bf16
    %73 = vector.broadcast %cst_31 : bf16 to vector<4x128xbf16>
    %c24 = arith.constant 24 : index
    %c0_32 = arith.constant 0 : index
    %74 = vector.load %arg15[%c24, %c0_32] : memref<28x128xbf16, #tpu.memory_space<vmem>>, vector<4x128xbf16>
    tpu.vector_store %arg15[%c24, %c0_32], %73 {strides = array<i32>} : memref<28x128xbf16, #tpu.memory_space<vmem>>, vector<4x128xbf16>,
    %c8 = arith.constant 8 : index
    %c0_33 = arith.constant 0 : index
    %75 = vector.load %arg15[%c8, %c0_33] : memref<28x128xbf16, #tpu.memory_space<vmem>>, vector<16x128xbf16>
    tpu.vector_store %arg15[%c8, %c0_33], %70 {strides = array<i32>} : memref<28x128xbf16, #tpu.memory_space<vmem>>, vector<16x128xbf16>,
    %c4 = arith.constant 4 : index
    %c0_34 = arith.constant 0 : index
    %76 = vector.load %arg15[%c4, %c0_34] : memref<28x128xbf16, #tpu.memory_space<vmem>>, vector<16x128xbf16>
    %c0_35 = arith.constant 0 : index
    %c0_36 = arith.constant 0 : index
    %c0_37 = arith.constant 0 : index
    %77 = vector.load %arg8[%c0_35, %c0_36, %c0_37] : memref<5x128x128xbf16, #tpu.memory_space<vmem>>, vector<1x128x128xbf16>
    %78 = vector.shape_cast %77 : vector<1x128x128xbf16> to vector<128x128xbf16>
    %cst_38 = arith.constant dense<0.000000e+00> : vector<16x128xf32>
    %79 = tpu.matmul %76, %78, %cst_38 {dimension_numbers = #tpu.dot_dimension_numbers<[1], [0], [0], [1], [0, 0, 1, 1], [], []>} : vector<16x128xbf16>, vector<128x128xbf16>, vector<16x128xf32> -> vector<16x128xf32>
    %c6 = arith.constant 6 : index
    %c0_39 = arith.constant 0 : index
    %80 = vector.load %arg15[%c6, %c0_39] : memref<28x128xbf16, #tpu.memory_space<vmem>>, vector<16x128xbf16>
    %c1 = arith.constant 1 : index
    %c0_40 = arith.constant 0 : index
    %c0_41 = arith.constant 0 : index
    %81 = vector.load %arg8[%c1, %c0_40, %c0_41] : memref<5x128x128xbf16, #tpu.memory_space<vmem>>, vector<1x128x128xbf16>
    %82 = vector.shape_cast %81 : vector<1x128x128xbf16> to vector<128x128xbf16>
    %cst_42 = arith.constant dense<0.000000e+00> : vector<16x128xf32>
    %83 = tpu.matmul %80, %82, %cst_42 {dimension_numbers = #tpu.dot_dimension_numbers<[1], [0], [0], [1], [0, 0, 1, 1], [], []>} : vector<16x128xbf16>, vector<128x128xbf16>, vector<16x128xf32> -> vector<16x128xf32>
    %84 = arith.addf %79, %83 : vector<16x128xf32>
    %c8_43 = arith.constant 8 : index
    %c0_44 = arith.constant 0 : index
    %85 = vector.load %arg15[%c8_43, %c0_44] : memref<28x128xbf16, #tpu.memory_space<vmem>>, vector<16x128xbf16>
    %c2 = arith.constant 2 : index
    %c0_45 = arith.constant 0 : index
    %c0_46 = arith.constant 0 : index
    %86 = vector.load %arg8[%c2, %c0_45, %c0_46] : memref<5x128x128xbf16, #tpu.memory_space<vmem>>, vector<1x128x128xbf16>
    %87 = vector.shape_cast %86 : vector<1x128x128xbf16> to vector<128x128xbf16>
    %cst_47 = arith.constant dense<0.000000e+00> : vector<16x128xf32>
    %88 = tpu.matmul %85, %87, %cst_47 {dimension_numbers = #tpu.dot_dimension_numbers<[1], [0], [0], [1], [0, 0, 1, 1], [], []>} : vector<16x128xbf16>, vector<128x128xbf16>, vector<16x128xf32> -> vector<16x128xf32>
    %89 = arith.addf %84, %88 : vector<16x128xf32>
    %c10 = arith.constant 10 : index
    %c0_48 = arith.constant 0 : index
    %90 = vector.load %arg15[%c10, %c0_48] : memref<28x128xbf16, #tpu.memory_space<vmem>>, vector<16x128xbf16>
    %c3 = arith.constant 3 : index
    %c0_49 = arith.constant 0 : index
    %c0_50 = arith.constant 0 : index
    %91 = vector.load %arg8[%c3, %c0_49, %c0_50] : memref<5x128x128xbf16, #tpu.memory_space<vmem>>, vector<1x128x128xbf16>
    %92 = vector.shape_cast %91 : vector<1x128x128xbf16> to vector<128x128xbf16>
    %cst_51 = arith.constant dense<0.000000e+00> : vector<16x128xf32>
    %93 = tpu.matmul %90, %92, %cst_51 {dimension_numbers = #tpu.dot_dimension_numbers<[1], [0], [0], [1], [0, 0, 1, 1], [], []>} : vector<16x128xbf16>, vector<128x128xbf16>, vector<16x128xf32> -> vector<16x128xf32>
    %94 = arith.addf %89, %93 : vector<16x128xf32>
    %c12 = arith.constant 12 : index
    %c0_52 = arith.constant 0 : index
    %95 = vector.load %arg15[%c12, %c0_52] : memref<28x128xbf16, #tpu.memory_space<vmem>>, vector<16x128xbf16>
    %c4_53 = arith.constant 4 : index
    %c0_54 = arith.constant 0 : index
    %c0_55 = arith.constant 0 : index
    %96 = vector.load %arg8[%c4_53, %c0_54, %c0_55] : memref<5x128x128xbf16, #tpu.memory_space<vmem>>, vector<1x128x128xbf16>
    %97 = vector.shape_cast %96 : vector<1x128x128xbf16> to vector<128x128xbf16>
    %cst_56 = arith.constant dense<0.000000e+00> : vector<16x128xf32>
    %98 = tpu.matmul %95, %97, %cst_56 {dimension_numbers = #tpu.dot_dimension_numbers<[1], [0], [0], [1], [0, 0, 1, 1], [], []>} : vector<16x128xbf16>, vector<128x128xbf16>, vector<16x128xf32> -> vector<16x128xf32>
    %99 = arith.addf %94, %98 : vector<16x128xf32>
    %c0_57 = arith.constant 0 : index
    %c0_58 = arith.constant 0 : index
    %100 = vector.load %arg9[%c0_57, %c0_58] : memref<1x128xf32, #tpu.memory_space<vmem>>, vector<1x128xf32>
    %101 = vector.broadcast %100 : vector<1x128xf32> to vector<16x128xf32>
    %102 = arith.addf %99, %101 : vector<16x128xf32>
    %c0_59 = arith.constant 0 : index
    %c0_60 = arith.constant 0 : index
    %103 = vector.load %arg10[%c0_59, %c0_60] : memref<1x128xf32, #tpu.memory_space<vmem>>, vector<1x128xf32>
    %c0_61 = arith.constant 0 : index
    %c0_62 = arith.constant 0 : index
    %104 = vector.load %arg11[%c0_61, %c0_62] : memref<1x128xf32, #tpu.memory_space<vmem>>, vector<1x128xf32>
    %cst_63 = arith.constant dense<0.000000e+00> : vector<16xf32>
    %105 = vector.multi_reduction <add>, %102, %cst_63 [1] : vector<16x128xf32> to vector<16xf32>
    %106 = vector.shape_cast %105 : vector<16xf32> to vector<16x1xf32>
    %cst_64 = arith.constant 3.125000e-02 : f32
    %107 = vector.broadcast %cst_64 : f32 to vector<16x1xf32>
    %108 = arith.mulf %106, %107 : vector<16x1xf32>
    %109 = vector.broadcast %108 : vector<16x1xf32> to vector<16x128xf32>
    %110 = arith.subf %102, %109 : vector<16x128xf32>
    %cst_65 = arith.constant 0.000000e+00 : f32
    %111 = vector.shape_cast %7 : vector<1x128xi1> to vector<1x128xi1>
    %112 = vector.broadcast %111 : vector<1x128xi1> to vector<16x128xi1>
    %113 = vector.broadcast %cst_65 : f32 to vector<16x128xf32>
    %114 = arith.select %112, %110, %113 : vector<16x128xi1>, vector<16x128xf32>
    %115 = arith.mulf %114, %114 : vector<16x128xf32>
    %cst_66 = arith.constant dense<0.000000e+00> : vector<16xf32>
    %116 = vector.multi_reduction <add>, %115, %cst_66 [1] : vector<16x128xf32> to vector<16xf32>
    %117 = vector.shape_cast %116 : vector<16xf32> to vector<16x1xf32>
    %cst_67 = arith.constant 3.125000e-02 : f32
    %118 = vector.broadcast %cst_67 : f32 to vector<16x1xf32>
    %119 = arith.mulf %117, %118 : vector<16x1xf32>
    %cst_68 = arith.constant 9.99999974E-6 : f32
    %120 = vector.broadcast %cst_68 : f32 to vector<16x1xf32>
    %121 = arith.addf %119, %120 : vector<16x1xf32>
    %122 = math.rsqrt %121 : vector<16x1xf32>
    %123 = vector.broadcast %122 : vector<16x1xf32> to vector<16x128xf32>
    %124 = arith.mulf %114, %123 : vector<16x128xf32>
    %125 = vector.broadcast %103 : vector<1x128xf32> to vector<16x128xf32>
    %126 = arith.mulf %124, %125 : vector<16x128xf32>
    %127 = vector.broadcast %104 : vector<1x128xf32> to vector<16x128xf32>
    %128 = arith.addf %126, %127 : vector<16x128xf32>
    %cst_69 = arith.constant 0.000000e+00 : f32
    %129 = vector.broadcast %cst_69 : f32 to vector<16x128xf32>
    %130 = arith.maximumf %128, %129 : vector<16x128xf32>
    %131 = arith.truncf %130 : vector<16x128xf32> to vector<16x128xbf16>
    %c0_70 = arith.constant 0 : index
    %c0_71 = arith.constant 0 : index
    %132 = vector.load %arg12[%c0_70, %c0_71] : memref<128x128xbf16, #tpu.memory_space<vmem>>, vector<128x128xbf16>
    %cst_72 = arith.constant dense<0.000000e+00> : vector<16x128xf32>
    %133 = tpu.matmul %131, %132, %cst_72 {dimension_numbers = #tpu.dot_dimension_numbers<[1], [0], [0], [1], [0, 0, 1, 1], [], []>} : vector<16x128xbf16>, vector<128x128xbf16>, vector<16x128xf32> -> vector<16x128xf32>
    %c0_73 = arith.constant 0 : index
    %c0_74 = arith.constant 0 : index
    %134 = vector.load %arg13[%c0_73, %c0_74] : memref<1x128xf32, #tpu.memory_space<vmem>>, vector<1x128xf32>
    %135 = vector.broadcast %134 : vector<1x128xf32> to vector<16x128xf32>
    %136 = arith.addf %133, %135 : vector<16x128xf32>
    %137 = arith.addf %1, %136 : vector<16x128xf32>
    %c0_75 = arith.constant 0 : index
    %c0_76 = arith.constant 0 : index
    %c0_77 = arith.constant 0 : index
    %138 = vector.load %arg14[%c0_75, %c0_76, %c0_77] : memref<1x16x128xf32, #tpu.memory_space<vmem>>, vector<1x16x128xf32>
    %139 = vector.shape_cast %138 : vector<1x16x128xf32> to vector<16x128xf32>
    %140 = vector.shape_cast %137 : vector<16x128xf32> to vector<1x16x128xf32>
    tpu.vector_store %arg14[%c0_75, %c0_76, %c0_77], %140 {strides = array<i32>} : memref<1x16x128xf32, #tpu.memory_space<vmem>>, vector<1x16x128xf32>,
    return
  }
  func.func @transform_0(%arg0: i32) -> (i32, i32, i32) {
    %c0_i32 = arith.constant 0 : i32
    %c0_i32_0 = arith.constant 0 : i32
    %c0_i32_1 = arith.constant 0 : i32
    return %arg0, %c0_i32, %c0_i32_0 : i32, i32, i32
  }
  func.func @transform_1(%arg0: i32) -> (i32, i32) {
    %c0_i32 = arith.constant 0 : i32
    %c0_i32_0 = arith.constant 0 : i32
    %c0_i32_1 = arith.constant 0 : i32
    return %c0_i32, %c0_i32_0 : i32, i32
  }
  func.func @transform_2(%arg0: i32) -> (i32, i32) {
    %c0_i32 = arith.constant 0 : i32
    %c0_i32_0 = arith.constant 0 : i32
    %c0_i32_1 = arith.constant 0 : i32
    return %c0_i32, %c0_i32_0 : i32, i32
  }
  func.func @transform_3(%arg0: i32) -> (i32, i32) {
    %c0_i32 = arith.constant 0 : i32
    %c0_i32_0 = arith.constant 0 : i32
    %c0_i32_1 = arith.constant 0 : i32
    return %c0_i32, %c0_i32_0 : i32, i32
  }
  func.func @transform_4(%arg0: i32) -> (i32, i32) {
    %c0_i32 = arith.constant 0 : i32
    %c0_i32_0 = arith.constant 0 : i32
    %c0_i32_1 = arith.constant 0 : i32
    return %c0_i32, %c0_i32_0 : i32, i32
  }
  func.func @transform_5(%arg0: i32) -> (i32, i32) {
    %c0_i32 = arith.constant 0 : i32
    %c0_i32_0 = arith.constant 0 : i32
    %c0_i32_1 = arith.constant 0 : i32
    return %c0_i32, %c0_i32_0 : i32, i32
  }
  func.func @transform_6(%arg0: i32) -> (i32, i32) {
    %c0_i32 = arith.constant 0 : i32
    %c0_i32_0 = arith.constant 0 : i32
    %c0_i32_1 = arith.constant 0 : i32
    return %c0_i32, %c0_i32_0 : i32, i32
  }
  func.func @transform_7(%arg0: i32) -> (i32, i32, i32) {
    %c0_i32 = arith.constant 0 : i32
    %c0_i32_0 = arith.constant 0 : i32
    %c0_i32_1 = arith.constant 0 : i32
    %c0_i32_2 = arith.constant 0 : i32
    return %c0_i32, %c0_i32_0, %c0_i32_1 : i32, i32, i32
  }
  func.func @transform_8(%arg0: i32) -> (i32, i32) {
    %c0_i32 = arith.constant 0 : i32
    %c0_i32_0 = arith.constant 0 : i32
    %c0_i32_1 = arith.constant 0 : i32
    return %c0_i32, %c0_i32_0 : i32, i32
  }
  func.func @transform_9(%arg0: i32) -> (i32, i32) {
    %c0_i32 = arith.constant 0 : i32
    %c0_i32_0 = arith.constant 0 : i32
    %c0_i32_1 = arith.constant 0 : i32
    return %c0_i32, %c0_i32_0 : i32, i32
  }
  func.func @transform_10(%arg0: i32) -> (i32, i32) {
    %c0_i32 = arith.constant 0 : i32
    %c0_i32_0 = arith.constant 0 : i32
    %c0_i32_1 = arith.constant 0 : i32
    return %c0_i32, %c0_i32_0 : i32, i32
  }
  func.func @transform_11(%arg0: i32) -> (i32, i32) {
    %c0_i32 = arith.constant 0 : i32
    %c0_i32_0 = arith.constant 0 : i32
    %c0_i32_1 = arith.constant 0 : i32
    return %c0_i32, %c0_i32_0 : i32, i32
  }
  func.func @transform_12(%arg0: i32) -> (i32, i32) {
    %c0_i32 = arith.constant 0 : i32
    %c0_i32_0 = arith.constant 0 : i32
    %c0_i32_1 = arith.constant 0 : i32
    return %c0_i32, %c0_i32_0 : i32, i32
  }
  func.func @transform_13(%arg0: i32) -> (i32, i32, i32) {
    %c0_i32 = arith.constant 0 : i32
    %c0_i32_0 = arith.constant 0 : i32
    %c0_i32_1 = arith.constant 0 : i32
    return %arg0, %c0_i32, %c0_i32_0 : i32, i32, i32
  }
}

</mosaic_0001>

<bundles_post_ra>
// kernel: tpu_custom_call.1
= control target key start
LH: loop header
LB: loop body
LE: loop exit
PB: predicated region body
PF: predicated region fallthrough
CT: control target
= control target key end

     0   :  { %s2679_s0 = inlined_call_operand.hbm [shape: f32[2,16,128], index: 0, kind: input, shape index: {}]   ;;  %s2680_s1 = inlined_call_operand.vmem [shape: f32[1,128], index: 1, kind: input, shape index: {}]   ;;  %s2681_s2 = inlined_call_operand.vmem [shape: f32[1,128], index: 2, kind: input, shape index: {}]   ;;  %s2682_s3 = inlined_call_operand.hbm [shape: bf16[128,128], index: 3, kind: input, shape index: {}]   ;;  %s2683_s4 = inlined_call_operand.vmem [shape: f32[1,128], index: 4, kind: input, shape index: {}]   ;;  %s2684_s5 = inlined_call_operand.vmem [shape: f32[1,128], index: 5, kind: input, shape index: {}]   ;;  %s2685_s6 = inlined_call_operand.vmem [shape: f32[1,128], index: 6, kind: input, shape index: {}]   ;;  %s2686_s7 = inlined_call_operand.hbm [shape: bf16[5,128,128], index: 7, kind: input, shape index: {}]   ;;  %s2687_s8 = inlined_call_operand.vmem [shape: f32[1,128], index: 8, kind: input, shape index: {}]   ;;  %s2688_s9 = inlined_call_operand.vmem [shape: f32[1,128], index: 9, kind: input, shape index: {}]   ;;  %s2689_s10 = inlined_call_operand.vmem [shape: f32[1,128], index: 10, kind: input, shape index: {}]   ;;  %s2690_s11 = inlined_call_operand.hbm [shape: bf16[128,128], index: 11, kind: input, shape index: {}]   ;;  %s2691_s12 = inlined_call_operand.vmem [shape: f32[1,128], index: 12, kind: input, shape index: {}]   ;;  %s2692_s13 = inlined_call_operand.hbm [shape: f32[2,16,128], index: 13, kind: output, shape index: {}]  }
   0x1   :  { %2700 = sst [smem:[#allocation20_spill]] %s2682_s3 }
   0x2   :  { %2701 = sst [smem:[#allocation21_spill]] %s2686_s7 }
   0x3   :  { %2702 = sst [smem:[#allocation22_spill]] %s2690_s11 }
   0x4   :  { %18 = vsyncpa [#allocation4], 0 }
   0x5   :  { %20 = vsyncpa [#allocation4 + $0x1], 0 }
   0x6   :  { %21 = vsyncpa [#allocation7], 0 }
   0x7   :  { %22 = vsyncpa [#allocation10], 0 }
   0x8   :  { %23 = vsyncpa [#allocation5], 0 }
   0x9   :  { %25 = vsyncpa [#allocation5 + $0x1], 0  ;;  %s2339_s25 = smov 0   ;;  %s2341_s26 = smov 0  }
   0xa   :  { %s2343_s27 = smov 0   ;;  %s2345_s28 = smov 0  }
   0xb LB: > { %2703 = sst [smem:[#allocation16_spill]] %s2241_s25  ;;  %s2360_s29 = sadd.s32 4294967295, %s2253_s28   ;;  %s2253_s28 = sphi %s2345_s28, %s2733_s28   ;;  %s2249_s27 = sphi %s2343_s27, %s2729_s27   ;;  %s2245_s26 = sphi %s2341_s26, %s2732_s26   ;;  %s2241_s25 = sphi %s2339_s25, %s2731_s25  }
   0xc   : > { %2704 = sst [smem:[#allocation17_spill]] %s2249_s27  ;;  %s1610_s30 = sadd.s32 4294967294, %s2253_s28  }
   0xd   : > { %p51_p0 = scmp.ne.s32.totalorder %s2245_s26, %s2241_s25  ;;  %p2694_p1 = scmp.eq.s32.totalorder %s2360_s29, 0 }
   0xe   : > { %p333_p3 = scmp.eq.s32.totalorder %s1610_s30, 1  ;;  %p1611_p5 = scmp.ge.s32.totalorder %s2253_s28, 1 }
   0xf   : > { %p2369_p4 = por %p2694_p1, %p51_p0  ;;  %p340_p7 = scmp.lt.s32.totalorder %s2253_s28, 3 }
  0x10   : > { %p2374_p6 = por %p333_p3, %p51_p0  ;;  %s2255_s17 = smov [#allocation6]  }
  0x11   : > { %s2705_s14 = scalar_select %p2369_p4, 1, 0 }
  0x12   : > { %s2706_s15 = scalar_select %p2374_p6, 1, 0 }
  0x13   : > { %p2379_p8 = pnand %p1611_p5, %p340_p7  ;;  %s358_s18 = sshll.u32 %s2255_s17, 4  ;;  %s359_s18 = int_to_ptr.vmem [resolvable:$true] %s358_s18 }
  0x14   : > { %2707 = sst [smem:[#allocation18_spill]] %s2706_s15  ;;  %s2256_s20 = smov [#allocation8]  }
  0x15   : > { %s2708_s16 = scalar_select %p2379_p8, 1, 0 }
  0x16   : > { %p1929_p9 = pneg %p2379_p8  ;;  %s380_s21 = sshll.u32 %s2256_s20, 4  ;;  %s381_s21 = int_to_ptr.vmem [resolvable:$true] %s380_s21 }
  0x17   : > { %s2257_s22 = smov [#allocation9]   ;;  %s2086_s24 = scalar_lea.vmem %s359_s18, 1024 }
  0x18   : > { %p2388_p11 = pnand %p1929_p9, %p2694_p1  ;;  %s402_s23 = sshll.u32 %s2257_s22, 4  ;;  %s403_s23 = int_to_ptr.vmem [resolvable:$true] %s402_s23 }
  0x19   : > { %p2087_p13 = scmp.ne.s32.totalorder %s359_s18, %s2086_s24  ;;  %p2094_p5 = scmp.lt.s32.totalorder %s359_s18, %s359_s18 }
  0x1a   : > { %p2077_p12 = pneg %p2388_p11  ;;  %p2095_p7 = scmp.lt.s32.totalorder %s2086_s24, %s2086_s24 }
  0x1c   : > { %p2089_p0 = pnand %p2087_p13, %p2077_p12  ;;  %p2096_p9 = por %p2095_p7, %p2094_p5 }
  0x1e   : > { %p2090_p3 = pneg %p2089_p0 }
  0x20   : > { %p2097_p10 = pnand %p2096_p9, %p2090_p3 }
  0x22   : > { %2100 = shalt.err (!%p2097_p10)
}
  0x23   : > { %s2258_s30 = smov 64   ;;  %s2259_s17 = smov 4  }
  0x24   : > { %s2710_s3 = sld [smem:[#allocation20_spill]]  ;;  %s2112_s15 = scalar_lea.vmem %s381_s21, 5120 }
  0x25   : > { %p2113_p1 = scmp.ne.s32.totalorder %s381_s21, %s2112_s15  ;;  %p2120_p2 = scmp.lt.s32.totalorder %s381_s21, %s381_s21 }
  0x26   : > { %p2121_p6 = scmp.lt.s32.totalorder %s2112_s15, %s2112_s15 }
  0x27   : > { %p2115_p13 = pnand %p2113_p1, %p2077_p12 }
  0x28   : > { %p2122_p5 = por %p2121_p6, %p2120_p2 }
  0x29   : > { %p2116_p0 = pneg %p2115_p13 }
  0x2a   : > { %1932 = dma.hbm_to_vmem [thread:$0]  (!%p2388_p11), %s2710_s3, 1024, %s359_s18, [#allocation7], %s2258_s30, %s2258_s30, %s2259_s17  }
  0x2b   : > { %p2123_p3 = pnand %p2122_p5, %p2116_p0 }
  0x2d   : > { %2126 = shalt.err (!%p2123_p3)
}
  0x2e   : > { %s2711_s7 = sld [smem:[#allocation21_spill]]  ;;  %s2138_s18 = scalar_lea.vmem %s403_s23, 1024 }
  0x2f   : > { %p2139_p10 = scmp.ne.s32.totalorder %s403_s23, %s2138_s18  ;;  %p2146_p9 = scmp.lt.s32.totalorder %s403_s23, %s403_s23 }
  0x30   : > { %p2147_p13 = scmp.lt.s32.totalorder %s2138_s18, %s2138_s18 }
  0x31   : > { %p2141_p7 = pnand %p2139_p10, %p2077_p12 }
  0x32   : > { %p2148_p4 = por %p2147_p13, %p2146_p9 }
  0x33   : > { %p2142_p1 = pneg %p2141_p7 }
  0x34   : > { %1935 = dma.hbm_to_vmem [thread:$0]  (!%p2388_p11), %s2711_s7, 5120, %s381_s21, [#allocation7], %s2258_s30, %s2258_s30, %s2259_s17  }
  0x35   : > { %p2149_p2 = pnand %p2148_p4, %p2142_p1 }
  0x37   : > { %2152 = shalt.err (!%p2149_p2)
}
  0x38   : > { %s2712_s11 = sld [smem:[#allocation22_spill]]  ;;  %s2419_s25 = sadd.s32 1, %s2253_s28  }
  0x39   : > { %s35_s21 = ssub.s32 %s2253_s28, %s2419_s25  ;;  %s38_s19 = sadd.s32 1, %s2249_s27 }
  0x3a   : > { %p36_p4 = scmp.eq.s32.totalorder %s35_s21, 0  ;;  %p45_p6 = scmp.ne.s32.totalorder %s2249_s27, %s2245_s26 }
  0x3b   : > { %p46_p12 = scmp.eq.s32.totalorder %s2253_s28, 0  ;;  %p1950_p0 = scmp.lt.s32.totalorder %s2253_s28, 2 }
  0x3c   : > { %s2429_s22 = scalar_select %p36_p4, %s2249_s27, %s38_s19  }
  0x3d   : > { %p47_p5 = por %p46_p12, %p45_p6  ;;  %p2714_p3 = scmp.eq.s32.totalorder %s2360_s29, 1 }
  0x3e   : > { %1938 = dma.hbm_to_vmem [thread:$0]  (!%p2388_p11), %s2712_s11, 1024, %s403_s23, [#allocation10], %s2258_s30, %s2258_s30, %s2259_s17  }
  0x3f   : > { %2713 = sst [smem:[#allocation19_spill]] %s2429_s22  ;;  %p2433_p10 = por %p2714_p3, %p45_p6 }
  0x40   : > { %s419_s18 = sand.u32 1, %s2249_s27   ;;  %s1706_s15 = sshll.u32 %s2253_s28, 8 }
  0x41   : > { %s2715_s24 = scalar_select %p2433_p10, 1, 0 }
  0x42   : > { %s1616_s23 = sshll.u32 %s419_s18, 4  ;;  %s2442_s20 = scalar_lea.hbm %s2679_s0, %s1706_s15 }
  0x43   : > { %s423_s21 = scalar_lea.vmem [#allocation3], %s1616_s23  ;;  %p2444_p11 = pnand %p1950_p0, %p47_p5 }
  0x44   : > { %s430_s19 = sshll.u32 %s423_s21, 4  ;;  %s2450_s7 = scalar_lea.sflag [#allocation4], %s419_s18  ;;  %s2448_s19 = int_to_ptr.vmem [resolvable:$true] %s430_s19 }
  0x45   : > { %s2153_s11 = scalar_lea.hbm %s2442_s20, 256  ;;  %p2155_p1 = pneg %p2444_p11 }
  0x46   : > { %p2154_p7 = scmp.ne.s32.totalorder %s2442_s20, %s2153_s11  ;;  %s2158_s23 = scalar_lea.hbm %s2679_s0, 512 }
  0x47   : > { %p2159_p2 = scmp.lt.s32.totalorder %s2442_s20, %s2679_s0  ;;  %p2160_p4 = scmp.lt.s32.totalorder %s2158_s23, %s2153_s11 }
  0x48   : > { %p2156_p9 = pnand %p2155_p1, %p2154_p7 }
  0x49   : > { %p2161_p6 = por %p2160_p4, %p2159_p2 }
  0x4a   : > { %p2157_p13 = pneg %p2156_p9 }
  0x4c   : > { %p2162_p12 = pnand %p2161_p6, %p2157_p13 }
  0x4e   : > { %2165 = shalt.err (!%p2162_p12)
}
  0x4f   : > { %s2166_s18 = scalar_lea.vmem %s2448_s19, 256  ;;  %s2260_s22 = smov [#allocation3]  }
  0x50   : > { %p2167_p0 = scmp.ne.s32.totalorder %s2448_s19, %s2166_s18  ;;  %s2171_s27 = sshll.u32 %s2260_s22, 4  ;;  %s2172_s27 = int_to_ptr.vmem [resolvable:$false] %s2171_s27 }
  0x51   : > { %s2173_s15 = scalar_lea.vmem %s2172_s27, 512  ;;  %p2174_p7 = scmp.lt.s32.totalorder %s2448_s19, %s2172_s27 }
  0x52   : > { %p2169_p5 = pnand %p2167_p0, %p2155_p1  ;;  %p2175_p9 = scmp.lt.s32.totalorder %s2173_s15, %s2166_s18 }
  0x54   : > { %p2170_p3 = pneg %p2169_p5  ;;  %p2176_p10 = por %p2175_p9, %p2174_p7 }
  0x56   : > { %p2177_p8 = pnand %p2176_p10, %p2170_p3 }
  0x58   : > { %2180 = shalt.err (!%p2177_p8)
}
  0x59   : > { %s2261_s11 = smov 128   ;;  %s2262_s30 = smov 8  }
  0x5a   : > { %1942 = dma.hbm_to_vmem [thread:$0]  (!%p2444_p11), %s2442_s20, 256, %s2448_s19, %s2450_s7, %s2261_s11, %s2261_s11, %s2262_s30  }
  0x5b   : > { %p2717_p1 = scmp.ne.s32.totalorder %s2708_s16, 0 }
  0x5c   : > { %s2474_s22 = sand.u32 (!%p2717_p1), 1, %s2245_s26   ;;  %p2718_p8 = scmp.ne.s32.totalorder (!%p2717_p1), %s2705_s14, 0 }
  0x5d   : > { %442 = sbr.rel (%p2717_p1) target bundleno = 1733 (0x6c5), region = 72  ;;  %s1620_s27 = sshll.u32 (!%p2717_p1), %s2474_s22, 4 }
  0x5e   : > { %s445_s23 = scalar_lea.sflag (!%p2717_p1), [#allocation4], %s2474_s22  ;;  %s448_s17 = scalar_lea.vmem (!%p2717_p1), [#allocation3], %s1620_s27 }
  0x62   : > { %2224 = dma.done.wait (%p2718_p8), %s445_s23, 256  }
  0x63   : > { %2226 = vsyncadd (%p2718_p8), %s445_s23, 4294967040  ;;  %p2719_p10 = scmp.eq.s32.totalorder %s2360_s29, 0 }
  0x65   : > { %2228 = dma.done.wait (%p2719_p10), [#allocation7], 6144   ;;  %p2720_p11 = pmov %p2719_p10 }
  0x66   : > { %p2721_p13 = pmov %p2719_p10 }
  0x67   : > { %2230 = vsyncadd (%p2720_p11), [#allocation7], 4294961152 }
  0x68   : > { %2232 = dma.done.wait (%p2721_p13), [#allocation10], 1024   ;;  %p2722_p2 = pmov %p2719_p10 }
  0x69   : > { %v2492_v0 = vld [vmem:[%s448_s17] sm:$0xff]  ;;  %v2494_v1 = vld [vmem:[%s448_s17 + $0x8] sm:$0xff]  ;;  %v506_v2 = vlaneseq  ;;  %v2263_v15 = vmov 0.0   ;;  %vm2264_vm1 = vmmov 0   ;;  %vm773_vm3 = vcmask 1044480   ;;  %s502_s19 = scalar_lea.vmem [#allocation11], %s1620_s27 }
  0x6a   : > { %2234 = vsyncadd (%p2722_p2), [#allocation10], 4294966272  ;;  %512 = vadd.xlane.f32.xlu0 %v2492_v0  ;;  %v1999_v14 = vld [vmem:[#allocation6 + $0x38] sm:$0xff]   ;;  %1773 = vmatprep.subr.bf16.mxu0 %v2263_v15  ;;  %v2000_v16 = vld [vmem:[#allocation6 + $0x30] sm:$0xff]   ;;  %vm873_vm4 = vcmask 1045504   ;;  %vm1108_vm5 = vcmask 1046528  }
  0x6b   : > { %v2498_v3 = vand.u32 127, %v506_v2  ;;  %1793 = vmatprep.subr.bf16.mxu1 %v2263_v15  ;;  %1774 = vmatpush3.bf16.msra.mxu0 %v1999_v14  ;;  %v2001_v17 = vld [vmem:[#allocation6 + $0x28] sm:$0xff]   ;;  %v2002_v18 = vld [vmem:[#allocation6 + $0x20] sm:$0xff]   ;;  %v2003_v19 = vld [vmem:[#allocation6 + $0x18] sm:$0xff]   ;;  %s1508_s21 = sshll.u32 %s502_s19, 4  ;;  %s1709_s18 = sshll.u32 %s2360_s29, 8  ;;  %s2630_s21 = int_to_ptr.vmem [resolvable:$true] %s1508_s21 }
  0x6c   : > { %1775 = vmatprep.subr.bf16.mxu0 %v2263_v15  ;;  %1789 = vmatprep.mubr.msk.bf16.mxu0 %vm2264_vm1, %v2263_v15  ;;  %v2004_v20 = vld [vmem:[#allocation6 + $0x10] sm:$0xff]   ;;  %v2005_v21 = vld [vmem:[#allocation6 + $0x8] sm:$0xff]   ;;  %v2006_v22 = vld [vmem:[#allocation6] sm:$0xff]   ;;  %s2635_s30 = scalar_lea.hbm %s2692_s13, %s1709_s18  ;;  %s1495_s27 = scalar_lea.sflag [#allocation5], %s2474_s22 }
  0x6d   : > { %vm508_vm0 = vcmp.lt.s32.totalorder %v2498_v3, 16  ;;  %1809 = vmatprep.mubr.msk.bf16.mxu1 %vm2264_vm1, %v2263_v15  ;;  %v1625_v30 = vld [vmem:[%s2680_s1] ss:$0 sm:$0xff]  ;;  %vm509_vm2 = vcmp.lt.s32.totalorder %v2498_v3, 32  ;;  %v2007_v59 = vld [vmem:[#allocation8 + $0x78] sm:$0xff]   ;;  %v2011_v63 = vld [vmem:[#allocation8 + $0x68] sm:$0xff]  }
  0x6e   : > { %514 = vadd.xlane.f32.xlu0 %v2494_v1  ;;  %v1626_v34 = vld [vmem:[%s2681_s2] ss:$0 sm:$0xff]  ;;  %v2008_v60 = vld [vmem:[#allocation8 + $0x38] sm:$0xff]   ;;  %1794 = vmatpush3.bf16.msra.mxu1 %v2007_v59  ;;  %v2012_v2 = vld [vmem:[#allocation8 + $0x28] sm:$0xff]   ;;  %s2181_s23 = scalar_lea.vmem %s2630_s21, 256  ;;  %p2723_p6 = scmp.ne.s32.totalorder %s2715_s24, 0 }
  0x6f   : > { %1776 = vmatpush3.bf16.msra.mxu0 %v2000_v16  ;;  %v1627_v42 = vld [vmem:[%s2683_s4] ss:$0 sm:$0xff]  ;;  %1795 = vmatprep.subr.bf16.mxu1 %v2263_v15  ;;  %v2022_v14 = vld [vmem:[#allocation8] sm:$0xff]   ;;  %p2182_p4 = scmp.ne.s32.totalorder %s2630_s21, %s2181_s23  ;;  %s2266_s29 = smov [#allocation11]  }
  0x70   : > { %1777 = vmatprep.subr.bf16.mxu0 %v2263_v15  ;;  %v2009_v61 = vld [vmem:[#allocation8 + $0x70] sm:$0xff]   ;;  %s2185_s17 = sshll.u32 %s2266_s29, 4  ;;  %s2186_s17 = int_to_ptr.vmem [resolvable:$false] %s2185_s17 }
  0x71   : > { %v2010_v62 = vld [vmem:[#allocation8 + $0x30] sm:$0xff]   ;;  %p2183_p12 = pnand %p2182_p4, %p2723_p6  ;;  %s2187_s3 = scalar_lea.vmem %s2186_s17, 512 }
  0x72   : > { %1796 = vmatpush3.bf16.msra.mxu1 %v2009_v61  ;;  %v2037_v59 = vld [vmem:[#allocation8 + $0x90] sm:$0xff]   ;;  %v2039_v61 = vld [vmem:[#allocation8 + $0x88] sm:$0xff]   ;;  %p2188_p5 = scmp.lt.s32.totalorder %s2630_s21, %s2186_s17  ;;  %p2189_p3 = scmp.lt.s32.totalorder %s2187_s3, %s2181_s23 }
  0x73   : > { %1778 = vmatpush3.bf16.msra.mxu0 %v2001_v17  ;;  %1797 = vmatprep.subr.bf16.mxu1 %v2263_v15  ;;  %v2060_v3 = vld [vmem:[#allocation9 + $0x10] sm:$0xff]   ;;  %p2184_p0 = pneg %p2183_p12 }
  0x74   : > { %1779 = vmatprep.subr.bf16.mxu0 %v2263_v15  ;;  %p2190_p7 = por %p2189_p3, %p2188_p5 }
  0x76   : > { %1798 = vmatpush3.bf16.msra.mxu1 %v2011_v63  ;;  %v2040_v63 = vld [vmem:[#allocation8 + $0xc8] sm:$0xff]   ;;  %p2191_p9 = pnand %p2190_p7, %p2184_p0 }
  0x77   : > { %1780 = vmatpush3.bf16.msra.mxu0 %v2002_v18  ;;  %1799 = vmatprep.subr.bf16.mxu1 %v2263_v15 }
  0x78   : > { %1781 = vmatprep.subr.bf16.mxu0 %v2263_v15 }
  0x7b   : > { %1782 = vmatpush3.bf16.msra.mxu0 %v2003_v19 }
  0x7c   : > { %1783 = vmatprep.subr.bf16.mxu0 %v2263_v15 }
  0x7f   : > { %1784 = vmatpush3.bf16.msra.mxu0 %v2004_v20 }
  0x80   : > { %1785 = vmatprep.subr.bf16.mxu0 %v2263_v15 }
  0x83   : > { %1786 = vmatpush3.bf16.msra.mxu0 %v2005_v21 }
  0x84   : > { %1787 = vmatprep.subr.bf16.mxu0 %v2263_v15 }
  0x87   : > { %1788 = vmatpush3.bf16.msra.mxu0 %v2006_v22 }
  0x88   : > { %1813 = vmatprep.subr.bf16.mxu0 %v2263_v15 }
  0xf3   : > { %v513_v4 = vpop.xlane.xlu0 %512 }
  0xf4   : > { %v516_v5 = vmul.f32 0.0625, %v513_v4  ;;  %v2013_v4 = vld [vmem:[#allocation8 + $0x60] sm:$0xff]  }
  0xf5   : > { %1800 = vmatpush3.bf16.msra.mxu1 %v2013_v4 }
  0xf6   : > { %v518_v6 = vsub.f32 %v2492_v0, %v516_v5  ;;  %v2014_v5 = vld [vmem:[#allocation8 + $0x20] sm:$0xff]   ;;  %1801 = vmatprep.subr.bf16.mxu1 %v2263_v15 }
  0xf7   : > { %v515_v7 = vpop.xlane.xlu0 %514 }
  0xf8   : > { %v517_v8 = vmul.f32 0.0625, %v515_v7  ;;  %v522_v9 = vsel %vm508_vm0, %v518_v6, 0.0  ;;  %v2015_v6 = vld [vmem:[#allocation8 + $0x58] sm:$0xff]  }
  0xf9   : > { %v524_v10 = vmul.f32 %v522_v9, %v522_v9  ;;  %v2016_v7 = vld [vmem:[#allocation8 + $0x18] sm:$0xff]   ;;  %1802 = vmatpush3.bf16.msra.mxu1 %v2015_v6  ;;  %v2041_v6 = vld [vmem:[#allocation8 + $0x80] sm:$0xff]  }
  0xfa   : > { %v519_v11 = vsub.f32 %v2494_v1, %v517_v8  ;;  %v2265_v8 = vmov 0   ;;  %1803 = vmatprep.subr.bf16.mxu1 %v2263_v15 }
  0xfb   : > { %526 = vadd.xlane.f32.xlu1 %v524_v10  ;;  %716 = vst [vmem:[#allocation2] sm:$0xf] %v2265_v8  ;;  %717 = vst [vmem:[#allocation2 + $0xc] sm:$0x3] %v2265_v8  ;;  %v2018_v10 = vld [vmem:[#allocation8 + $0x10] sm:$0xff]  }
  0xfc   : > { %v523_v12 = vsel %vm508_vm0, %v519_v11, 0.0  ;;  %v2019_v11 = vld [vmem:[#allocation8 + $0x48] sm:$0xff]  }
  0xfd   : > { %v525_v13 = vmul.f32 %v523_v12, %v523_v12 }
  0xff   : > { %528 = vadd.xlane.f32.xlu1 %v525_v13  ;;  %v2021_v13 = vld [vmem:[#allocation8 + $0x40] sm:$0xff]  }
 0x184   : > { %v527_v23 = vpop.xlane.xlu1 %526 }
 0x185   : > { %v530_v24 = vmul.f32 0.0625, %v527_v23  ;;  %v1636_v23 = vld [vmem:[%s2684_s5] ss:$0 sm:$0xff] }
 0x187   : > { %v532_v25 = vadd.f32 1e-05, %v530_v24 }
 0x188   : > { %v529_v26 = vpop.xlane.xlu1 %528 }
 0x189   : > { %2063 = vrsqrt.f32 %v532_v25  ;;  %v531_v27 = vmul.f32 0.0625, %v529_v26  ;;  %v1637_v25 = vld [vmem:[%s2685_s6] ss:$0 sm:$0xff] }
 0x18b   : > { %v533_v28 = vadd.f32 1e-05, %v531_v27 }
 0x18d   : > { %2065 = vrsqrt.f32 %v533_v28 }
 0x196   : > { %v2064_v29 = vpop.eup %2063 }
 0x197   : > { %v536_v31 = vmul.f32 %v2064_v29, %v522_v9  ;;  %v2017_v9 = vld [vmem:[#allocation8 + $0x50] sm:$0xff]  }
 0x198   : > { %1804 = vmatpush3.bf16.msra.mxu1 %v2017_v9 }
 0x199   : > { %v544_v32 = vmul.f32 %v1625_v30, %v536_v31  ;;  %1805 = vmatprep.subr.bf16.mxu1 %v2263_v15 }
 0x19a   : > { %v2066_v33 = vpop.eup %2065 }
 0x19b   : > { %v537_v35 = vmul.f32 %v2066_v33, %v523_v12  ;;  %v552_v37 = vadd.f32 %v1626_v34, %v544_v32  ;;  %v2020_v12 = vld [vmem:[#allocation8 + $0x8] sm:$0xff]  }
 0x19c   : > { %1806 = vmatpush3.bf16.msra.mxu1 %v2019_v11  ;;  %v2045_v11 = vld [vmem:[#allocation8 + $0x138] sm:$0xff]  }
 0x19d   : > { %v545_v36 = vmul.f32 %v1625_v30, %v537_v35  ;;  %v554_v39 = vmax.f32 %v552_v37, 0.0  ;;  %1807 = vmatprep.subr.bf16.mxu1 %v2263_v15 }
 0x19f   : > { %v553_v38 = vadd.f32 %v1626_v34, %v545_v36  ;;  %v746_v36 = vld [vmem:[#allocation2] sm:$0x8] }
 0x1a0   : > { %1808 = vmatpush3.bf16.msra.mxu1 %v2021_v13 }
 0x1a1   : > { %v555_v40 = vmax.f32 %v553_v38, 0.0  ;;  %1833 = vmatprep.subr.bf16.mxu1 %v2263_v15  ;;  %v727_v38 = vld [vmem:[#allocation2] sm:$0xc] }
 0x1a3   : > { %v556_v41 = vpack.c.bf16 %v555_v40, %v554_v39 }
 0x1a5   : > { %1790 = vmatmul.mubr.bf16.vlgmr.msra.gmra.mxu0 %v556_v41 }
 0x1a6   : > { %1829 = vmatprep.mubr.msk.bf16.mxu0 %vm2264_vm1, %v2263_v15  ;;  %1814 = vmatpush3.bf16.msra.mxu0 %v2008_v60  ;;  %v2038_v60 = vld [vmem:[#allocation8 + $0xd0] sm:$0xff]  }
 0x1a7   : > { %1815 = vmatprep.subr.bf16.mxu0 %v2263_v15 }
 0x1aa   : > { %1816 = vmatpush3.bf16.msra.mxu0 %v2010_v62 }
 0x1ab   : > { %1817 = vmatprep.subr.bf16.mxu0 %v2263_v15 }
 0x1ae   : > { %1818 = vmatpush3.bf16.msra.mxu0 %v2012_v2 }
 0x1af   : > { %1819 = vmatprep.subr.bf16.mxu0 %v2263_v15 }
 0x1b2   : > { %1820 = vmatpush3.bf16.msra.mxu0 %v2014_v5  ;;  %v2044_v5 = vld [vmem:[#allocation2 + $0xc] ss:$0 sps:$4 sm:$0x11]  }
 0x1b3   : > { %1821 = vmatprep.subr.bf16.mxu0 %v2263_v15 }
 0x1b6   : > { %1822 = vmatpush3.bf16.msra.mxu0 %v2016_v7  ;;  %v2042_v7 = vld [vmem:[#allocation8 + $0xc0] sm:$0xff]  }
 0x1b7   : > { %1823 = vmatprep.subr.bf16.mxu0 %v2263_v15 }
 0x1ba   : > { %1824 = vmatpush3.bf16.msra.mxu0 %v2018_v10  ;;  %v1110_v10 = vrot.slane %v2044_v5, 1 }
 0x1bb   : > { %1825 = vmatprep.subr.bf16.mxu0 %v2263_v15 }
 0x1be   : > { %1826 = vmatpush3.bf16.msra.mxu0 %v2020_v12 }
 0x1bf   : > { %1827 = vmatprep.subr.bf16.mxu0 %v2263_v15 }
 0x1c2   : > { %1828 = vmatpush3.bf16.msra.mxu0 %v2022_v14  ;;  %v2046_v14 = vld [vmem:[#allocation8 + $0x130] sm:$0xff]  }
 0x1c3   : > { %1853 = vmatprep.subr.bf16.mxu0 %v2263_v15 }
 0x265   : > { %v662_v43 = vpop.f32.mrf.mxu0 }
 0x266   : > { %v663_v44 = vadd.f32 %v1627_v42, %v662_v43 }
 0x267   : > { %v1791_v45 = vpop.f32.mrf.mxu0 }
 0x268   : > { %671 = vadd.xlane.f32.xlu0 %v663_v44  ;;  %v2027_v45 = vld [vmem:[#allocation8 + $0xb8] sm:$0xff]  }
 0x269   : > { %v665_v46 = vpop.f32.mrf.mxu0 }
 0x26a   : > { %v666_v47 = vadd.f32 %v1627_v42, %v665_v46 }
 0x26b   : > { %v1792_v48 = vpop.f32.mrf.mxu0 }
 0x26c   : > { %673 = vadd.xlane.f32.xlu1 %v666_v47  ;;  %v2028_v48 = vld [vmem:[#allocation8 + $0xf8] sm:$0xff]  }
 0x2f1   : > { %v672_v49 = vpop.xlane.xlu0 %671 }
 0x2f2   : > { %v675_v50 = vmul.f32 0.03125, %v672_v49 }
 0x2f4   : > { %v677_v51 = vsub.f32 %v663_v44, %v675_v50 }
 0x2f5   : > { %v674_v52 = vpop.xlane.xlu1 %673 }
 0x2f6   : > { %v676_v53 = vmul.f32 0.03125, %v674_v52  ;;  %v2531_v54 = vsel %vm509_vm2, %v677_v51, 0.0  ;;  %v2029_v51 = vld [vmem:[#allocation8 + $0xb0] sm:$0xff]  }
 0x2f7   : > { %v683_v55 = vmul.f32 %v2531_v54, %v2531_v54  ;;  %v2030_v52 = vld [vmem:[#allocation8 + $0xf0] sm:$0xff]  }
 0x2f8   : > { %v678_v56 = vsub.f32 %v666_v47, %v676_v53  ;;  %v2031_v53 = vld [vmem:[#allocation8 + $0xa8] sm:$0xff]  }
 0x2f9   : > { %685 = vadd.xlane.f32.xlu0 %v683_v55  ;;  %v2033_v55 = vld [vmem:[#allocation8 + $0xa0] sm:$0xff]  }
 0x2fa   : > { %v2537_v57 = vsel %vm509_vm2, %v678_v56, 0.0  ;;  %v2034_v56 = vld [vmem:[#allocation8 + $0xe0] sm:$0xff]  }
 0x2fb   : > { %v684_v58 = vmul.f32 %v2537_v57, %v2537_v57 }
 0x2fd   : > { %687 = vadd.xlane.f32.xlu1 %v684_v58  ;;  %v2036_v58 = vld [vmem:[#allocation8 + $0xd8] sm:$0xff]  }
 0x382   : > { %v686_v16 = vpop.xlane.xlu0 %685 }
 0x383   : > { %v689_v17 = vmul.f32 0.03125, %v686_v16  ;;  %v2047_v16 = vld [vmem:[#allocation8 + $0x128] sm:$0xff]  }
 0x385   : > { %v691_v18 = vadd.f32 1e-05, %v689_v17  ;;  %v2048_v17 = vld [vmem:[#allocation8 + $0x120] sm:$0xff]  }
 0x386   : > { %v688_v19 = vpop.xlane.xlu1 %687 }
 0x387   : > { %2067 = vrsqrt.f32 %v691_v18  ;;  %v690_v20 = vmul.f32 0.03125, %v688_v19  ;;  %v2049_v18 = vld [vmem:[#allocation8 + $0x118] sm:$0xff]   ;;  %v2050_v19 = vld [vmem:[#allocation8 + $0x110] sm:$0xff]  }
 0x389   : > { %v692_v21 = vadd.f32 1e-05, %v690_v20  ;;  %v2051_v20 = vld [vmem:[#allocation8 + $0x108] sm:$0xff]  }
 0x38b   : > { %2069 = vrsqrt.f32 %v692_v21 }
 0x394   : > { %v2068_v22 = vpop.eup %2067 }
 0x395   : > { %v695_v24 = vmul.f32 %v2068_v22, %v2531_v54  ;;  %v2032_v54 = vld [vmem:[#allocation8 + $0xe8] sm:$0xff]  }
 0x397   : > { %v703_v26 = vmul.f32 %v1636_v23, %v695_v24  ;;  %v2052_v24 = vld [vmem:[#allocation8 + $0x100] sm:$0xff]  }
 0x398   : > { %v2070_v27 = vpop.eup %2069 }
 0x399   : > { %v711_v28 = vadd.f32 %v1637_v25, %v703_v26  ;;  %v696_v29 = vmul.f32 %v2070_v27, %v2537_v57  ;;  %v2035_v57 = vld [vmem:[#allocation8 + $0x98] sm:$0xff]  }
 0x39b   : > { %v713_v30 = vmax.f32 %v711_v28, 0.0  ;;  %v704_v31 = vmul.f32 %v1636_v23, %v696_v29  ;;  %v2054_v23 = vld [vmem:[#allocation2 + $0xc] ss:$0 sps:$4 sm:$0x33]  }
 0x39c   : > { %v1230_v26 = vrot.slane %v2054_v23, 2  ;;  %v1690_v23 = vld [vmem:[%s2688_s9] ss:$0 sm:$0xff] }
 0x39d   : > { %v1707_v32 = vpack.c.bf16 %v713_v30, %v713_v30  ;;  %v712_v33 = vadd.f32 %v1637_v25, %v704_v31 }
 0x39f   : > { %725 = vst [vmem:[#allocation2 + $0x4] sm:$0xf] %v1707_v32  ;;  %v714_v34 = vmax.f32 %v712_v33, 0.0 }
 0x3a1   : > { %v1708_v35 = vpack.c.bf16 %v714_v34, %v714_v34 }
 0x3a3   : > { %726 = vst [vmem:[#allocation2 + $0x8] sm:$0xf] %v1708_v35 }
 0x3a6   : > { %v2565_v37 = vld [vmem:[#allocation2 + $0x4] sm:$0xf] }
 0x3a7   : > { %v1640_v39 = vcombine.low %v746_v36, %v2565_v37  ;;  %v1650_v40 = vcombine.low %v727_v38, %v2565_v37  ;;  %v1080_v2 = vld [vmem:[#allocation2 + $0x4] sm:$0xe] }
 0x3a8   : > { %v1204_v21 = vld [vmem:[#allocation2 + $0x4] sm:$0xc] }
 0x3a9   : > { %v774_v43 = vrot.slane %v1640_v39, 3  ;;  %v874_v46 = vrot.slane %v1650_v40, 2 }
 0x3aa   : > { %v2024_v41 = vld [vmem:[#allocation2 + $0x8] ss:$0 sps:$4 sm:$0x77]  }
 0x3ab   : > { %v2026_v42 = vld [vmem:[#allocation2 + $0x8] ss:$0 sps:$4 sm:$0x33]   ;;  %v775_v44 = vrot.slane %v2024_v41, 3 }
 0x3ac   : > { %v875_v47 = vrot.slane %v2026_v42, 2  ;;  %v1081_v62 = vld [vmem:[#allocation2 + $0x8] sm:$0xf] }
 0x3ad   : > { %v776_v49 = vsel %vm773_vm3, %v774_v43, %v775_v44  ;;  %v1669_v4 = vcombine.low %v1080_v2, %v1081_v62  ;;  %v967_v8 = vld [vmem:[#allocation2 + $0x8] sm:$0xf]  ;;  %v1679_v22 = vcombine.low %v1204_v21, %v1081_v62 }
 0x3ae   : > { %1810 = vmatmul.mubr.bf16.vlgmr.msra.gmra.mxu1 %v776_v49  ;;  %v876_v50 = vsel %vm873_vm4, %v874_v46, %v875_v47  ;;  %v1660_v12 = vcombine.low %v2565_v37, %v967_v8  ;;  %v2055_v8 = vld [vmem:[#allocation9 + $0x38] sm:$0xff]  }
 0x3af   : > { %1830 = vmatmul.mubr.bf16.vlgmr.msra.gmra.mxu0 %v876_v50  ;;  %1834 = vmatpush3.bf16.msra.mxu1 %v2027_v45  ;;  %v1109_v9 = vrot.slane %v1669_v4, 1  ;;  %v1229_v25 = vrot.slane %v1679_v22, 2  ;;  %v1689_v50 = vld [vmem:[%s2687_s8] ss:$0 sm:$0xff] }
 0x3b0   : > { %1854 = vmatpush3.bf16.msra.mxu0 %v2028_v48  ;;  %1835 = vmatprep.subr.bf16.mxu1 %v2263_v15 }
 0x3b1   : > { %1855 = vmatprep.subr.bf16.mxu0 %v2263_v15  ;;  %1849 = vmatprep.mubr.msk.bf16.mxu1 %vm2264_vm1, %v2263_v15  ;;  %v1111_v13 = vsel %vm1108_vm5, %v1109_v9, %v1110_v10  ;;  %v1231_v27 = vsel %vm873_vm4, %v1229_v25, %v1230_v26  ;;  %v2056_v9 = vld [vmem:[#allocation9 + $0x30] sm:$0xff]   ;;  %v2057_v10 = vld [vmem:[#allocation9 + $0x28] sm:$0xff]  }
 0x3b2   : > { %1869 = vmatprep.mubr.msk.bf16.mxu0 %vm2264_vm1, %v2263_v15 }
 0x3b3   : > { %1836 = vmatpush3.bf16.msra.mxu1 %v2029_v51 }
 0x3b4   : > { %1856 = vmatpush3.bf16.msra.mxu0 %v2030_v52  ;;  %1837 = vmatprep.subr.bf16.mxu1 %v2263_v15 }
 0x3b5   : > { %1857 = vmatprep.subr.bf16.mxu0 %v2263_v15 }
 0x3b7   : > { %1838 = vmatpush3.bf16.msra.mxu1 %v2031_v53 }
 0x3b8   : > { %1858 = vmatpush3.bf16.msra.mxu0 %v2032_v54  ;;  %1839 = vmatprep.subr.bf16.mxu1 %v2263_v15 }
 0x3b9   : > { %1859 = vmatprep.subr.bf16.mxu0 %v2263_v15 }
 0x3bb   : > { %1840 = vmatpush3.bf16.msra.mxu1 %v2033_v55 }
 0x3bc   : > { %1860 = vmatpush3.bf16.msra.mxu0 %v2034_v56  ;;  %1841 = vmatprep.subr.bf16.mxu1 %v2263_v15 }
 0x3bd   : > { %1861 = vmatprep.subr.bf16.mxu0 %v2263_v15 }
 0x3bf   : > { %1842 = vmatpush3.bf16.msra.mxu1 %v2035_v57 }
 0x3c0   : > { %1862 = vmatpush3.bf16.msra.mxu0 %v2036_v58  ;;  %1843 = vmatprep.subr.bf16.mxu1 %v2263_v15 }
 0x3c1   : > { %1863 = vmatprep.subr.bf16.mxu0 %v2263_v15 }
 0x3c3   : > { %1844 = vmatpush3.bf16.msra.mxu1 %v2037_v59 }
 0x3c4   : > { %1864 = vmatpush3.bf16.msra.mxu0 %v2038_v60  ;;  %1845 = vmatprep.subr.bf16.mxu1 %v2263_v15 }
 0x3c5   : > { %1865 = vmatprep.subr.bf16.mxu0 %v2263_v15 }
 0x3c7   : > { %1846 = vmatpush3.bf16.msra.mxu1 %v2039_v61 }
 0x3c8   : > { %1866 = vmatpush3.bf16.msra.mxu0 %v2040_v63  ;;  %1847 = vmatprep.subr.bf16.mxu1 %v2263_v15 }
 0x3c9   : > { %1867 = vmatprep.subr.bf16.mxu0 %v2263_v15 }
 0x3cb   : > { %1848 = vmatpush3.bf16.msra.mxu1 %v2041_v6 }
 0x3cc   : > { %1868 = vmatpush3.bf16.msra.mxu0 %v2042_v7  ;;  %1873 = vmatprep.subr.bf16.mxu1 %v2263_v15 }
 0x3cd   : > { %1893 = vmatprep.subr.bf16.mxu0 %v2263_v15 }
 0x3ce   : > { %1850 = vmatmul.mubr.bf16.vlgmr.msra.gmra.mxu1 %v1660_v12  ;;  %v2059_v12 = vld [vmem:[#allocation9 + $0x18] sm:$0xff]  }
 0x3cf   : > { %1870 = vmatmul.mubr.bf16.vlgmr.msra.gmra.mxu0 %v1111_v13  ;;  %1874 = vmatpush3.bf16.msra.mxu1 %v2045_v11  ;;  %v2058_v11 = vld [vmem:[#allocation9 + $0x20] sm:$0xff]   ;;  %v2061_v13 = vld [vmem:[#allocation9 + $0x8] sm:$0xff]  }
 0x3d0   : > { %1875 = vmatprep.subr.bf16.mxu1 %v2263_v15  ;;  %1889 = vmatprep.mubr.msk.bf16.mxu1 %vm2264_vm1, %v2263_v15 }
 0x3d1   : > { %1909 = vmatprep.mubr.msk.bf16.mxu0 %vm2264_vm1, %v2263_v15  ;;  %1894 = vmatpush3.bf16.msra.mxu0 %v2055_v8 }
 0x3d2   : > { %1895 = vmatprep.subr.bf16.mxu0 %v2263_v15 }
 0x3d3   : > { %1876 = vmatpush3.bf16.msra.mxu1 %v2046_v14  ;;  %v2062_v14 = vld [vmem:[#allocation9] sm:$0xff]  }
 0x3d4   : > { %1877 = vmatprep.subr.bf16.mxu1 %v2263_v15 }
 0x3d5   : > { %1896 = vmatpush3.bf16.msra.mxu0 %v2056_v9 }
 0x3d6   : > { %1897 = vmatprep.subr.bf16.mxu0 %v2263_v15 }
 0x3d7   : > { %1878 = vmatpush3.bf16.msra.mxu1 %v2047_v16 }
 0x3d8   : > { %1879 = vmatprep.subr.bf16.mxu1 %v2263_v15 }
 0x3d9   : > { %1898 = vmatpush3.bf16.msra.mxu0 %v2057_v10 }
 0x3da   : > { %1899 = vmatprep.subr.bf16.mxu0 %v2263_v15 }
 0x3db   : > { %1880 = vmatpush3.bf16.msra.mxu1 %v2048_v17 }
 0x3dc   : > { %1881 = vmatprep.subr.bf16.mxu1 %v2263_v15 }
 0x3dd   : > { %1900 = vmatpush3.bf16.msra.mxu0 %v2058_v11 }
 0x3de   : > { %1901 = vmatprep.subr.bf16.mxu0 %v2263_v15 }
 0x3df   : > { %1882 = vmatpush3.bf16.msra.mxu1 %v2049_v18 }
 0x3e0   : > { %1883 = vmatprep.subr.bf16.mxu1 %v2263_v15 }
 0x3e1   : > { %1902 = vmatpush3.bf16.msra.mxu0 %v2059_v12 }
 0x3e2   : > { %1903 = vmatprep.subr.bf16.mxu0 %v2263_v15 }
 0x3e3   : > { %1884 = vmatpush3.bf16.msra.mxu1 %v2050_v19 }
 0x3e4   : > { %1885 = vmatprep.subr.bf16.mxu1 %v2263_v15 }
 0x3e5   : > { %1904 = vmatpush3.bf16.msra.mxu0 %v2060_v3 }
 0x3e6   : > { %1905 = vmatprep.subr.bf16.mxu0 %v2263_v15 }
 0x3e7   : > { %1886 = vmatpush3.bf16.msra.mxu1 %v2051_v20 }
 0x3e8   : > { %1887 = vmatprep.subr.bf16.mxu1 %v2263_v15 }
 0x3e9   : > { %1906 = vmatpush3.bf16.msra.mxu0 %v2061_v13 }
 0x3ea   : > { %1907 = vmatprep.subr.bf16.mxu0 %v2263_v15  ;;  %v1691_v15 = vld [vmem:[%s2689_s10] ss:$0 sm:$0xff] }
 0x3eb   : > { %1888 = vmatpush3.bf16.msra.mxu1 %v2052_v24 }
 0x3ed   : > { %1908 = vmatpush3.bf16.msra.mxu0 %v2062_v14 }
 0x3ee   : > { %1890 = vmatmul.mubr.bf16.vlgmr.msra.gmra.mxu1 %v1231_v27 }
 0x46e   : > { %v860_v28 = vpop.f32.mrf.mxu1 }
 0x46f   : > { %v960_v29 = vpop.f32.mrf.mxu0 }
 0x470   : > { %v1811_v30 = vpop.f32.mrf.mxu1  ;;  %v961_v44 = vadd.f32 %v960_v29, %v860_v28 }
 0x471   : > { %v1831_v31 = vpop.f32.mrf.mxu0 }
 0x472   : > { %v863_v32 = vpop.f32.mrf.mxu1 }
 0x473   : > { %v963_v33 = vpop.f32.mrf.mxu0 }
 0x474   : > { %v1812_v34 = vpop.f32.mrf.mxu1  ;;  %v964_v46 = vadd.f32 %v963_v33, %v863_v32 }
 0x475   : > { %v1832_v35 = vpop.f32.mrf.mxu0  ;;  %v1692_v34 = vld [vmem:[%s2691_s12] ss:$0 sm:$0xff] }
 0x48e   : > { %v1071_v36 = vpop.f32.mrf.mxu1 }
 0x48f   : > { %v1195_v37 = vpop.f32.mrf.mxu0  ;;  %v1078_v45 = vadd.f32 %v1071_v36, %v961_v44 }
 0x490   : > { %v1851_v38 = vpop.f32.mrf.mxu1 }
 0x491   : > { %v1871_v39 = vpop.f32.mrf.mxu0  ;;  %v1202_v47 = vadd.f32 %v1195_v37, %v1078_v45 }
 0x492   : > { %v1074_v40 = vpop.f32.mrf.mxu1 }
 0x493   : > { %v1198_v41 = vpop.f32.mrf.mxu0  ;;  %v1079_v48 = vadd.f32 %v1074_v40, %v964_v46 }
 0x494   : > { %v1852_v42 = vpop.f32.mrf.mxu1 }
 0x495   : > { %v1872_v43 = vpop.f32.mrf.mxu0  ;;  %v1203_v53 = vadd.f32 %v1198_v41, %v1079_v48 }
 0x4ae   : > { %v1315_v49 = vpop.f32.mrf.mxu1 }
 0x4af   : > { %v1322_v51 = vadd.f32 %v1315_v49, %v1202_v47 }
 0x4b0   : > { %v1891_v52 = vpop.f32.mrf.mxu1 }
 0x4b1   : > { %v1331_v54 = vadd.f32 %v1689_v50, %v1322_v51 }
 0x4b2   : > { %v1318_v55 = vpop.f32.mrf.mxu1 }
 0x4b3   : > { %v1323_v56 = vadd.f32 %v1318_v55, %v1203_v53  ;;  %1335 = vadd.xlane.f32.xlu0 %v1331_v54 }
 0x4b4   : > { %v1892_v57 = vpop.f32.mrf.mxu1 }
 0x4b5   : > { %v1332_v58 = vadd.f32 %v1689_v50, %v1323_v56 }
 0x4b7   : > { %1337 = vadd.xlane.f32.xlu1 %v1332_v58 }
 0x53c   : > { %v1336_v59 = vpop.xlane.xlu0 %1335 }
 0x53d   : > { %v1339_v60 = vmul.f32 0.03125, %v1336_v59 }
 0x53f   : > { %v1341_v61 = vsub.f32 %v1331_v54, %v1339_v60 }
 0x540   : > { %v1338_v62 = vpop.xlane.xlu1 %1337 }
 0x541   : > { %v1340_v63 = vmul.f32 0.03125, %v1338_v62  ;;  %v1343_v2 = vsel %vm509_vm2, %v1341_v61, 0.0 }
 0x542   : > { %v1345_v4 = vmul.f32 %v1343_v2, %v1343_v2 }
 0x543   : > { %v1342_v5 = vsub.f32 %v1332_v58, %v1340_v63 }
 0x544   : > { %1347 = vadd.xlane.f32.xlu0 %v1345_v4 }
 0x545   : > { %v1344_v6 = vsel %vm509_vm2, %v1342_v5, 0.0 }
 0x546   : > { %v1346_v7 = vmul.f32 %v1344_v6, %v1344_v6 }
 0x548   : > { %1349 = vadd.xlane.f32.xlu1 %v1346_v7 }
 0x5cd   : > { %v1348_v16 = vpop.xlane.xlu0 %1347 }
 0x5ce   : > { %v1351_v17 = vmul.f32 0.03125, %v1348_v16 }
 0x5d0   : > { %v1353_v18 = vadd.f32 1e-05, %v1351_v17 }
 0x5d1   : > { %v1350_v19 = vpop.xlane.xlu1 %1349 }
 0x5d2   : > { %2071 = vrsqrt.f32 %v1353_v18  ;;  %v1352_v20 = vmul.f32 0.03125, %v1350_v19 }
 0x5d4   : > { %v1354_v21 = vadd.f32 1e-05, %v1352_v20 }
 0x5d6   : > { %2073 = vrsqrt.f32 %v1354_v21 }
 0x5df   : > { %v2072_v22 = vpop.eup %2071 }
 0x5e0   : > { %v1357_v24 = vmul.f32 %v2072_v22, %v1343_v2 }
 0x5e2   : > { %v1365_v25 = vmul.f32 %v1690_v23, %v1357_v24 }
 0x5e3   : > { %v2074_v26 = vpop.eup %2073 }
 0x5e4   : > { %v1358_v27 = vmul.f32 %v2074_v26, %v1344_v6  ;;  %v1373_v29 = vadd.f32 %v1691_v15, %v1365_v25 }
 0x5e6   : > { %v1366_v28 = vmul.f32 %v1690_v23, %v1358_v27  ;;  %v1375_v31 = vmax.f32 %v1373_v29, 0.0 }
 0x5e8   : > { %v1374_v30 = vadd.f32 %v1691_v15, %v1366_v28 }
 0x5ea   : > { %v1376_v32 = vmax.f32 %v1374_v30, 0.0 }
 0x5ec   : > { %v1377_v33 = vpack.c.bf16 %v1376_v32, %v1375_v31 }
 0x5ee   : > { %1910 = vmatmul.mubr.bf16.vlgmr.msra.gmra.mxu0 %v1377_v33 }
 0x6ae   : > { %v1483_v35 = vpop.f32.mrf.mxu0 }
 0x6af   : > { %v1484_v36 = vadd.f32 %v1692_v34, %v1483_v35 }
 0x6b0   : > { %v1911_v37 = vpop.f32.mrf.mxu0 }
 0x6b1   : > { %v1490_v38 = vadd.f32 %v1484_v36, %v2492_v0 }
 0x6b2   : > { %v1486_v39 = vpop.f32.mrf.mxu0 }
 0x6b3   : > { %1492 = vst [vmem:[%s502_s19] sm:$0xff] %v1490_v38  ;;  %v1487_v40 = vadd.f32 %v1692_v34, %v1486_v39 }
 0x6b4   : > { %v1912_v41 = vpop.f32.mrf.mxu0 }
 0x6b5   : > { %v1491_v42 = vadd.f32 %v1487_v40, %v2494_v1 }
 0x6b7   : > { %1493 = vst [vmem:[%s502_s19 + $0x8] sm:$0xff] %v1491_v42 }
 0x6b8   : > { %2194 = shalt.err (!%p2191_p9)
}
 0x6b9   : > { %s2195_s7 = scalar_lea.hbm %s2635_s30, 256  ;;  %s2199_s20 = scalar_lea.hbm %s2692_s13, 512 }
 0x6ba   : > { %p2196_p1 = scmp.ne.s32.totalorder %s2635_s30, %s2195_s7  ;;  %p2200_p11 = scmp.lt.s32.totalorder %s2635_s30, %s2692_s13 }
 0x6bb   : > { %p2201_p13 = scmp.lt.s32.totalorder %s2199_s20, %s2195_s7 }
 0x6bc   : > { %p2197_p8 = pnand %p2196_p1, %p2723_p6 }
 0x6bd   : > { %p2202_p2 = por %p2201_p13, %p2200_p11 }
 0x6be   : > { %p2198_p10 = pneg %p2197_p8 }
 0x6c0   : > { %p2203_p4 = pnand %p2202_p2, %p2198_p10 }
 0x6c2   : > { %2206 = shalt.err (!%p2203_p4)
}
 0x6c3   : > { %s2267_s15 = smov 128   ;;  %s2268_s11 = smov 8  }
 0x6c4   : > { %1927 = dma.vmem_to_hbm [thread:$0]  (%p2723_p6), %s2630_s21, 256, %s2635_s30, %s1495_s27, %s2267_s15, %s2267_s15, %s2268_s11  }
 0x6c5 PF: > { %s2724_s23 = sld [smem:[#allocation16_spill]]  ;;  %p2727_p0 = scmp.ge.s32.totalorder %s2253_s28, 2 }
 0x6c6   : > { %s2725_s29 = sld [smem:[#allocation18_spill]] }
 0x6cb   : > { %s1523_s17 = sand.u32 1, %s2724_s23  }
 0x6cc   : > { %p2726_p12 = scmp.ne.s32.totalorder %s2725_s29, 0  ;;  %s1524_s3 = scalar_lea.sflag [#allocation5], %s1523_s17 }
 0x6ce   : > { %p1944_p5 = pnand %p2727_p0, %p2726_p12 }
 0x6d0   : > { %p1945_p3 = pneg %p1944_p5 }
 0x6d2   : > { %2236 = dma.done.wait (%p1945_p3), %s1524_s3, 256  }
 0x6d3   : > { %2238 = vsyncadd (%p1945_p3), %s1524_s3, 4294967040  ;;  %s2728_s7 = sld [smem:[#allocation17_spill]]  ;;  %s2730_s14 = smov %s2419_s25 }
 0x6d4   : > { %s2729_s27 = sld [smem:[#allocation19_spill]]  ;;  %p28_p7 = scmp.ge.s32.totalorder %s2419_s25, 4  }
 0x6d5   : > { %s2731_s25 = smov %s2245_s26  ;;  %s2733_s28 = smov %s2730_s14 }
 0x6d6   :  { %30 = sbr.rel (!%p28_p7) target bundleno = 11 (0xb), region = 133 }
 0x6d9   : > { %s2732_s26 = smov %s2728_s7 }
 0x6db   :  { %1529 = vsyncpa [#allocation4], 1 }
 0x6dc   :  { %1531 = vsyncpa [#allocation4 + $0x1], 1 }
 0x6dd   :  { %1532 = vsyncpa [#allocation7], 1 }
 0x6de   :  { %1533 = vsyncpa [#allocation10], 1 }
 0x6df   :  { %1534 = vsyncpa [#allocation5], 1 }
 0x6e0   :  { %1536 = vsyncpa [#allocation5 + $0x1], 1 }

</bundles_post_ra>
